<compile_context>
chip_gen: v7x
topology: tpu7x:2x2x1
jax: 0.10.0
libtpu: 0.0.40
codegen_flags: <defaults>
</compile_context>

<pallas_src>
import jax
import jax.numpy as jnp
from jax.experimental import pallas as pl
from jax.experimental.pallas import tpu as pltpu


def _round_up(n, m):
    return ((n + m - 1) // m) * m


def fcdap_kernel(x_ref, w1_ref, b1_ref, w2_ref, b2_ref, w3_ref, b3_ref, o_ref):
    # Cast x to bf16 in-kernel (hidden under the DMA) — bf16 operands, f32 accumulate.
    x = x_ref[...].astype(jnp.bfloat16)
    # Layer 1: Linear + bias + ReLU
    h1 = jnp.dot(x, w1_ref[...], preferred_element_type=jnp.float32)
    h1 = jnp.maximum(h1 + b1_ref[...], 0.0)
    # Layer 2: Linear + bias + ReLU
    h2 = jnp.dot(h1.astype(jnp.bfloat16), w2_ref[...],
                 preferred_element_type=jnp.float32)
    h2 = jnp.maximum(h2 + b2_ref[...], 0.0)
    # Output layer: Linear (logits, no activation), compact (tb, out_dim) store.
    out = jnp.dot(h2.astype(jnp.bfloat16), w3_ref[...],
                  preferred_element_type=jnp.float32)
    o_ref[...] = (out + b3_ref[...]).astype(o_ref.dtype)


def fcdap_forward(x, params, *, block_batch=4096):
    """Fused 3-layer MLP forward in a single batch-tiled Pallas kernel.

    x: (batch, input_dim) float32
    params: dict with w1 (in,h0), b1 (1,h0), w2 (h0,h1), b2 (1,h1),
            w3 (h1,out), b3 (1,out)   (PyTorch x @ W.T + b, weights pre-transposed)
    """
    batch, input_dim = x.shape
    h0 = params["w1"].shape[1]
    h1 = params["w2"].shape[1]
    out_dim = params["w3"].shape[1]

    # Batch tile: multiple of 8 sublanes; big default amortizes per-step overhead,
    # still only a few MiB of double-buffered VMEM (output block is lane-padded to
    # 128 internally -> ~512 B/row f32), safe on v5e (16 MiB scoped) through v7x.
    tb = min(block_batch, _round_up(batch, 8))
    # Keep >=2 grid steps when the batch allows so v7x's 2 TensorCores both get work.
    if batch >= 16 and pl.cdiv(batch, tb) < 2:
        tb = _round_up(pl.cdiv(batch, 2), 8)
    grid = (pl.cdiv(batch, tb),)  # ragged edge block handled by Pallas masking

    # Weights cast once to bf16 (MXU-native, ~10 KB total); biases stay f32.
    w1 = params["w1"].astype(jnp.bfloat16)
    w2 = params["w2"].astype(jnp.bfloat16)
    w3 = params["w3"].astype(jnp.bfloat16)
    b1 = params["b1"].astype(jnp.float32)
    b2 = params["b2"].astype(jnp.float32)
    b3 = params["b3"].astype(jnp.float32)

    def resident(shape):
        # Same block every grid step -> weights/biases stay resident in VMEM.
        return pl.BlockSpec(shape, lambda i: (0, 0))

    flops = 2 * batch * (input_dim * h0 + h0 * h1 + h1 * out_dim)
    bytes_accessed = (batch * (input_dim + out_dim) * 4        # x in (f32) + logits out (f32)
                      + 2 * (input_dim * h0 + h0 * h1 + h1 * out_dim)  # bf16 weights
                      + 4 * (h0 + h1 + out_dim))               # f32 biases

    out = pl.pallas_call(
        fcdap_kernel,
        out_shape=jax.ShapeDtypeStruct((batch, out_dim), jnp.float32),
        grid=grid,
        in_specs=[
            pl.BlockSpec((tb, input_dim), lambda i: (i, 0)),   # x: tiled over batch
            resident((input_dim, h0)), resident((1, h0)),       # w1, b1
            resident((h0, h1)), resident((1, h1)),              # w2, b2
            resident((h1, out_dim)), resident((1, out_dim)),    # w3, b3 (unpadded)
        ],
        out_specs=pl.BlockSpec((tb, out_dim), lambda i: (i, 0)),
        compiler_params=pltpu.CompilerParams(
            dimension_semantics=("parallel",),   # batch axis -> both TCs on v7x
        ),
        cost_estimate=pl.CostEstimate(
            flops=flops, transcendentals=0, bytes_accessed=bytes_accessed),
    )(x, w1, b1, w2, b2, w3, b3)

    return out


def init_params(key, input_dim, output_dim, hidden_dims=(32, 32)):
    """Deterministic synthetic parameter init (uniform, like nn.Linear's default scale)."""
    dims = (input_dim,) + tuple(hidden_dims) + (output_dim,)
    params = {}
    for i in range(3):
        fan_in, fan_out = dims[i], dims[i + 1]
        key, kw, kb = jax.random.split(key, 3)
        bound = 1.0 / jnp.sqrt(fan_in)
        params[f"w{i+1}"] = jax.random.uniform(
            kw, (fan_in, fan_out), jnp.float32, -bound, bound)
        params[f"b{i+1}"] = jax.random.uniform(
            kb, (1, fan_out), jnp.float32, -bound, bound)
    return params


def fcdap_reference(x, params, *, bf16_operands=True):
    """Pure-JAX reference. With bf16_operands=True it mirrors the kernel's casting."""
    cast = (lambda a: a.astype(jnp.bfloat16)) if bf16_operands else (lambda a: a)
    h = jnp.dot(cast(x), cast(params["w1"]), preferred_element_type=jnp.float32)
    h = jnp.maximum(h + params["b1"], 0.0)
    h = jnp.dot(cast(h), cast(params["w2"]), preferred_element_type=jnp.float32)
    h = jnp.maximum(h + params["b2"], 0.0)
    out = jnp.dot(cast(h), cast(params["w3"]), preferred_element_type=jnp.float32)
    return out + params["b3"]


if __name__ == "__main__":
    input_dim = 4      # e.g. CartPole-like observation
    output_dim = 2     # discrete action logits

    key = jax.random.PRNGKey(0)
    params = init_params(key, input_dim, output_dim)

    # Small single-tile case (batch=8, one grid step).
    key, kx = jax.random.split(key)
    x_small = jax.random.normal(kx, (8, input_dim), jnp.float32)
    logits = jax.block_until_ready(fcdap_forward(x_small, params))
    assert logits.shape == (8, output_dim)
    assert jnp.allclose(logits, fcdap_reference(x_small, params), atol=1e-3, rtol=1e-3)
    # Loose sanity check against the full-f32 reference (bf16 operand rounding only).
    assert jnp.allclose(logits, fcdap_reference(x_small, params, bf16_operands=False),
                        atol=1e-1, rtol=1e-1)

    # Multi-tile case (batch=1000 -> tb=504, grid=(2,), exercises pipelining, the
    # ragged edge block and compact (batch, out_dim) writeback).
    key, kx = jax.random.split(key)
    x_big = jax.random.normal(kx, (1000, input_dim), jnp.float32)
    logits_big = jax.block_until_ready(fcdap_forward(x_big, params))
    assert logits_big.shape == (1000, output_dim)
    assert jnp.allclose(logits_big, fcdap_reference(x_big, params), atol=1e-3, rtol=1e-3)

    # TODO(synk): select_action's Categorical sampling / log_prob / entropy is RL glue,
    # not part of the module's forward hot path; only the MLP forward is kernelized.
    print("KERNEL_OK")
</pallas_src>

<mosaic_0001>
module attributes {stable_mosaic.version = 11 : i64} {
  func.func @fcdap_kernel(%arg0: i32, %arg1: memref<8x4xf32, #tpu.memory_space<vmem>>, %arg2: memref<4x32xbf16, #tpu.memory_space<vmem>>, %arg3: memref<1x32xf32, #tpu.memory_space<vmem>>, %arg4: memref<32x32xbf16, #tpu.memory_space<vmem>>, %arg5: memref<1x32xf32, #tpu.memory_space<vmem>>, %arg6: memref<32x2xbf16, #tpu.memory_space<vmem>>, %arg7: memref<1x2xf32, #tpu.memory_space<vmem>>, %arg8: memref<8x2xf32, #tpu.memory_space<vmem>>) attributes {dimension_semantics = [#tpu.dimension_semantics<parallel>], iteration_bounds = array<i64: 1>, scalar_prefetch = 0 : i64, scratch_operands = 0 : i64, tpu.core_type = #tpu.core_type<tc>, window_params = [{transform_indices = @transform_0, window_bounds = array<i64: 8, 4>}, {pipeline_mode = #tpu.pipeline_mode<synchronous>, transform_indices = @transform_1, window_bounds = array<i64: 4, 32>}, {pipeline_mode = #tpu.pipeline_mode<synchronous>, transform_indices = @transform_2, window_bounds = array<i64: 1, 32>}, {pipeline_mode = #tpu.pipeline_mode<synchronous>, transform_indices = @transform_3, window_bounds = array<i64: 32, 32>}, {pipeline_mode = #tpu.pipeline_mode<synchronous>, transform_indices = @transform_4, window_bounds = array<i64: 1, 32>}, {pipeline_mode = #tpu.pipeline_mode<synchronous>, transform_indices = @transform_5, window_bounds = array<i64: 32, 2>}, {pipeline_mode = #tpu.pipeline_mode<synchronous>, transform_indices = @transform_6, window_bounds = array<i64: 1, 2>}, {transform_indices = @transform_7, window_bounds = array<i64: 8, 2>}]} {
    %c0 = arith.constant 0 : index
    %c0_0 = arith.constant 0 : index
    %0 = vector.load %arg1[%c0, %c0_0] : memref<8x4xf32, #tpu.memory_space<vmem>>, vector<8x4xf32>
    %1 = arith.truncf %0 : vector<8x4xf32> to vector<8x4xbf16>
    %c0_1 = arith.constant 0 : index
    %c0_2 = arith.constant 0 : index
    %2 = vector.load %arg2[%c0_1, %c0_2] : memref<4x32xbf16, #tpu.memory_space<vmem>>, vector<4x32xbf16>
    %cst = arith.constant dense<0.000000e+00> : vector<8x32xf32>
    %3 = tpu.matmul %1, %2, %cst {dimension_numbers = #tpu.dot_dimension_numbers<[1], [0], [0], [1], [0, 0, 1, 1], [], []>} : vector<8x4xbf16>, vector<4x32xbf16>, vector<8x32xf32> -> vector<8x32xf32>
    %c0_3 = arith.constant 0 : index
    %c0_4 = arith.constant 0 : index
    %4 = vector.load %arg3[%c0_3, %c0_4] : memref<1x32xf32, #tpu.memory_space<vmem>>, vector<1x32xf32>
    %5 = vector.broadcast %4 : vector<1x32xf32> to vector<8x32xf32>
    %6 = arith.addf %3, %5 : vector<8x32xf32>
    %cst_5 = arith.constant 0.000000e+00 : f32
    %7 = vector.broadcast %cst_5 : f32 to vector<8x32xf32>
    %8 = arith.maximumf %6, %7 : vector<8x32xf32>
    %9 = arith.truncf %8 : vector<8x32xf32> to vector<8x32xbf16>
    %c0_6 = arith.constant 0 : index
    %c0_7 = arith.constant 0 : index
    %10 = vector.load %arg4[%c0_6, %c0_7] : memref<32x32xbf16, #tpu.memory_space<vmem>>, vector<32x32xbf16>
    %cst_8 = arith.constant dense<0.000000e+00> : vector<8x32xf32>
    %11 = tpu.matmul %9, %10, %cst_8 {dimension_numbers = #tpu.dot_dimension_numbers<[1], [0], [0], [1], [0, 0, 1, 1], [], []>} : vector<8x32xbf16>, vector<32x32xbf16>, vector<8x32xf32> -> vector<8x32xf32>
    %c0_9 = arith.constant 0 : index
    %c0_10 = arith.constant 0 : index
    %12 = vector.load %arg5[%c0_9, %c0_10] : memref<1x32xf32, #tpu.memory_space<vmem>>, vector<1x32xf32>
    %13 = vector.broadcast %12 : vector<1x32xf32> to vector<8x32xf32>
    %14 = arith.addf %11, %13 : vector<8x32xf32>
    %cst_11 = arith.constant 0.000000e+00 : f32
    %15 = vector.broadcast %cst_11 : f32 to vector<8x32xf32>
    %16 = arith.maximumf %14, %15 : vector<8x32xf32>
    %17 = arith.truncf %16 : vector<8x32xf32> to vector<8x32xbf16>
    %c0_12 = arith.constant 0 : index
    %c0_13 = arith.constant 0 : index
    %18 = vector.load %arg6[%c0_12, %c0_13] : memref<32x2xbf16, #tpu.memory_space<vmem>>, vector<32x2xbf16>
    %cst_14 = arith.constant dense<0.000000e+00> : vector<8x2xf32>
    %19 = tpu.matmul %17, %18, %cst_14 {dimension_numbers = #tpu.dot_dimension_numbers<[1], [0], [0], [1], [0, 0, 1, 1], [], []>} : vector<8x32xbf16>, vector<32x2xbf16>, vector<8x2xf32> -> vector<8x2xf32>
    %c0_15 = arith.constant 0 : index
    %c0_16 = arith.constant 0 : index
    %20 = vector.load %arg7[%c0_15, %c0_16] : memref<1x2xf32, #tpu.memory_space<vmem>>, vector<1x2xf32>
    %21 = vector.broadcast %20 : vector<1x2xf32> to vector<8x2xf32>
    %22 = arith.addf %19, %21 : vector<8x2xf32>
    %c0_17 = arith.constant 0 : index
    %c0_18 = arith.constant 0 : index
    %23 = vector.load %arg8[%c0_17, %c0_18] : memref<8x2xf32, #tpu.memory_space<vmem>>, vector<8x2xf32>
    tpu.vector_store %arg8[%c0_17, %c0_18], %22 {strides = array<i32>} : memref<8x2xf32, #tpu.memory_space<vmem>>, vector<8x2xf32>,
    return
  }
  func.func @transform_0(%arg0: i32) -> (i32, i32) {
    %c0_i32 = arith.constant 0 : i32
    %c0_i32_0 = arith.constant 0 : i32
    return %arg0, %c0_i32 : i32, i32
  }
  func.func @transform_1(%arg0: i32) -> (i32, i32) {
    %c0_i32 = arith.constant 0 : i32
    %c0_i32_0 = arith.constant 0 : i32
    %c0_i32_1 = arith.constant 0 : i32
    return %c0_i32, %c0_i32_0 : i32, i32
  }
  func.func @transform_2(%arg0: i32) -> (i32, i32) {
    %c0_i32 = arith.constant 0 : i32
    %c0_i32_0 = arith.constant 0 : i32
    %c0_i32_1 = arith.constant 0 : i32
    return %c0_i32, %c0_i32_0 : i32, i32
  }
  func.func @transform_3(%arg0: i32) -> (i32, i32) {
    %c0_i32 = arith.constant 0 : i32
    %c0_i32_0 = arith.constant 0 : i32
    %c0_i32_1 = arith.constant 0 : i32
    return %c0_i32, %c0_i32_0 : i32, i32
  }
  func.func @transform_4(%arg0: i32) -> (i32, i32) {
    %c0_i32 = arith.constant 0 : i32
    %c0_i32_0 = arith.constant 0 : i32
    %c0_i32_1 = arith.constant 0 : i32
    return %c0_i32, %c0_i32_0 : i32, i32
  }
  func.func @transform_5(%arg0: i32) -> (i32, i32) {
    %c0_i32 = arith.constant 0 : i32
    %c0_i32_0 = arith.constant 0 : i32
    %c0_i32_1 = arith.constant 0 : i32
    return %c0_i32, %c0_i32_0 : i32, i32
  }
  func.func @transform_6(%arg0: i32) -> (i32, i32) {
    %c0_i32 = arith.constant 0 : i32
    %c0_i32_0 = arith.constant 0 : i32
    %c0_i32_1 = arith.constant 0 : i32
    return %c0_i32, %c0_i32_0 : i32, i32
  }
  func.func @transform_7(%arg0: i32) -> (i32, i32) {
    %c0_i32 = arith.constant 0 : i32
    %c0_i32_0 = arith.constant 0 : i32
    return %arg0, %c0_i32 : i32, i32
  }
}

</mosaic_0001>

<bundles_post_ra>
// kernel: tpu_custom_call.1
= control target key start
LH: loop header
LB: loop body
LE: loop exit
PB: predicated region body
PF: predicated region fallthrough
CT: control target
= control target key end

     0   :  { %vm41_vm0 = vcmask 1041408   ;;  %v274_v0 = vmov 0.0   ;;  %vm275_vm1 = vmmov 0   ;;  %vm37_vm2 = vcmask 31744   ;;  %s346_s1 = inlined_call_operand.vmem [shape: bf16[4,32], index: 1, kind: input, shape index: {}]   ;;  %s347_s0 = inlined_call_operand.vmem [shape: f32[8,4], index: 0, kind: input, shape index: {}]   ;;  %s348_s3 = inlined_call_operand.vmem [shape: bf16[32,32], index: 3, kind: input, shape index: {}]   ;;  %s349_s5 = inlined_call_operand.vmem [shape: bf16[32,2], index: 5, kind: input, shape index: {}]   ;;  %s350_s2 = inlined_call_operand.vmem [shape: f32[1,32], index: 2, kind: input, shape index: {}]   ;;  %s351_s4 = inlined_call_operand.vmem [shape: f32[1,32], index: 4, kind: input, shape index: {}]   ;;  %s352_s6 = inlined_call_operand.vmem [shape: f32[1,2], index: 6, kind: input, shape index: {}]   ;;  %s353_s7 = inlined_call_operand.vmem [shape: f32[8,2], index: 7, kind: output, shape index: {}]  }
   0x1   :  { %246 = vmatprep.subr.bf16.mxu0 %v274_v0  ;;  %v29_v1 = vld [vmem:[%s346_s1] sm:$0x3]  ;;  %248 = vmatprep.mubr.msk.bf16.mxu0 %vm275_vm1, %v274_v0  ;;  %v271_v6 = vld [vmem:[%s348_s3 + $0x8] sm:$0xff]   ;;  %vm110_vm3 = vcmask 261120   ;;  %vm222_vm4 = vcmask 15360  }
   0x2   :  { %v27_v2 = vld [vmem:[%s347_s0] sm:$0xff]  ;;  %v43_v3 = vsel %vm41_vm0, %v29_v1, 0  ;;  %252 = vmatprep.subr.bf16.mxu1 %v274_v0  ;;  %256 = vmatprep.mubr.msk.bf16.mxu1 %vm275_vm1, %v274_v0  ;;  %v273_v16 = vld [vmem:[%s349_s5 + $0x8] sm:$0xff]  }
   0x3   :  { %v28_v4 = vpack.c.bf16 %v27_v2, %v27_v2  ;;  %247 = vmatpush3.bf16.msra.mxu0 %v43_v3  ;;  %v270_v5 = vld [vmem:[%s348_s3] sm:$0xff]  }
   0x4   :  { %260 = vmatprep.subr.bf16.mxu0 %v274_v0  ;;  %253 = vmatpush3.bf16.msra.mxu1 %v270_v5  ;;  %v272_v7 = vld [vmem:[%s349_s5] sm:$0xff]  }
   0x5   :  { %254 = vmatprep.subr.bf16.mxu1 %v274_v0  ;;  %v228_v8 = vld [vmem:[%s350_s2] ss:$0 sm:$0xff] }
   0x6   :  { %249 = vmatmul.mubr.msk.bf16.vlgmr.msra.gmra.mrb[0].mxu0 %vm37_vm2, %v28_v4  ;;  %v230_v17 = vld [vmem:[%s351_s4] ss:$0 sm:$0xff] }
   0x7   :  { %264 = vmatprep.mubr.msk.bf16.mxu0 %vm275_vm1, %v274_v0  ;;  %261 = vmatpush3.bf16.msra.mxu0 %v272_v7  ;;  %v234_v25 = vld [vmem:[%s352_s6] ss:$0 sm:$0xff] }
   0x8   :  { %255 = vmatpush3.bf16.msra.mxu1 %v271_v6  ;;  %262 = vmatprep.subr.bf16.mxu0 %v274_v0 }
   0xb   :  { %263 = vmatpush3.bf16.msra.mxu0 %v273_v16 }
  0xd9   :  { %v79_v9 = vpop.f32.mrb[0].mxu0 }
  0xda   :  { %v80_v10 = vadd.f32 %v228_v8, %v79_v9  ;;  %v250_v11 = vpop.f32.mrb[1].mxu0 }
  0xdb   :  { %v82_v12 = vpop.f32.mrb[2].mxu0 }
  0xdc   :  { %v85_v13 = vmax.f32 %v80_v10, 0.0  ;;  %v251_v14 = vpop.f32.mrb[3].mxu0 }
  0xde   :  { %v86_v15 = vpack.c.bf16 %v85_v13, %v85_v13 }
  0xe0   :  { %257 = vmatmul.mubr.msk.bf16.vlgmr.msra.gmra.mrb[0].mxu1 %vm110_vm3, %v86_v15 }
 0x1b3   :  { %v148_v18 = vpop.f32.mrb[0].mxu1 }
 0x1b4   :  { %v149_v19 = vadd.f32 %v230_v17, %v148_v18  ;;  %v258_v20 = vpop.f32.mrb[1].mxu1 }
 0x1b5   :  { %v151_v21 = vpop.f32.mrb[2].mxu1 }
 0x1b6   :  { %v154_v22 = vmax.f32 %v149_v19, 0.0  ;;  %v259_v23 = vpop.f32.mrb[3].mxu1 }
 0x1b8   :  { %v155_v24 = vpack.c.bf16 %v154_v22, %v154_v22 }
 0x1ba   :  { %265 = vmatmul.mubr.msk.bf16.vlgmr.msra.gmra.mrb[4].mxu0 %vm110_vm3, %v155_v24 }
 0x28d   :  { %v216_v26 = vpop.f32.mrb[4].mxu0 }
 0x28e   :  { %v217_v27 = vadd.f32 %v234_v25, %v216_v26  ;;  %v266_v28 = vpop.f32.mrb[5].mxu0 }
 0x28f   :  { %v219_v29 = vpop.f32.mrb[6].mxu0 }
 0x290   :  { %223 = vst.msk [vmem:[%s353_s7] sm:$0xff] %vm222_vm4, %v217_v27  ;;  %v267_v30 = vpop.f32.mrb[7].mxu0 }

</bundles_post_ra>
